<compile_context>
chip_gen: v7x
topology: tpu7x:2x2x1
jax: 0.10.0
libtpu: 0.0.40
codegen_flags: <defaults>
</compile_context>

<pallas_src>
import functools

import jax
import jax.numpy as jnp
from jax.experimental import pallas as pl
from jax.experimental.pallas import tpu as pltpu


def _lstm_fc_kernel(x_ref, w_ih_ref, w_hh_ref, b_ref, w_fc_ref, b_fc_ref,
                    h0_ref, c0_ref,
                    y_ref, hn_ref, cn_ref,
                    hs_ref,
                    *, seq_len, batch_padded, hidden):
    """Whole sequence in one invocation: unrolled LSTM recurrence + epilogue FC."""
    T, Bp, H = seq_len, batch_padded, hidden

    # ---- hoisted loads / precompute (outside the unrolled time loop) -------
    w_hh = w_hh_ref[...]                                     # (H, 4H)

    # Input projection for ALL timesteps with a single MXU call, bias folded:
    #   xg_all[t*Bp + b, :] = x[t, b, :] @ W_ih + (b_ih + b_hh)
    xg_all = (jnp.dot(x_ref[...], w_ih_ref[...],
                      preferred_element_type=jnp.float32)
              + b_ref[...])                                  # (T*Bp, 4H)

    # Lane mask selecting the "g" (cell candidate, tanh) gate region.
    lane = jax.lax.broadcasted_iota(jnp.int32, (Bp, 4 * H), 1)
    g_lane = (lane >= 2 * H) & (lane < 3 * H)

    # Recurrent state carried in vregs.
    h = h0_ref[...].astype(jnp.float32)                      # (Bp, H)
    c = c0_ref[...].astype(jnp.float32)                      # (Bp, H)

    for t in range(T):  # static T -> fully unrolled at trace time
        # gates: (Bp, 4H), PyTorch order [i, f, g, o]
        gates = xg_all[t * Bp:(t + 1) * Bp, :] + jnp.dot(
            h, w_hh, preferred_element_type=jnp.float32)

        # One EUP pass: tanh on the "g" lanes, sigmoid-via-tanh on the rest
        # (sigmoid(x) = 0.5*tanh(x/2) + 0.5).
        pre = jnp.where(g_lane, gates, 0.5 * gates)
        tnh = jnp.tanh(pre)
        act = jnp.where(g_lane, tnh, 0.5 * tnh + 0.5)

        i_g = act[:, 0 * H:1 * H]
        f_g = act[:, 1 * H:2 * H]
        g_g = act[:, 2 * H:3 * H]
        o_g = act[:, 3 * H:4 * H]

        c = f_g * c + i_g * g_g
        h = o_g * jnp.tanh(c)

        # Stash h_t for the post-loop FC (sublane-aligned static-slice store,
        # off the recurrence critical path).
        hs_ref[t * Bp:(t + 1) * Bp, :] = h

    # ---- epilogue: one FC matmul over all timesteps, single store ----------
    y = (jnp.dot(hs_ref[...], w_fc_ref[...],
                 preferred_element_type=jnp.float32)
         + b_fc_ref[...])                                    # (T*Bp, O)
    y_ref[...] = y.astype(y_ref.dtype)
    hn_ref[...] = h.astype(hn_ref.dtype)
    cn_ref[...] = c.astype(cn_ref.dtype)


def load_forecaster_forward(x, hidden, params):
    """Forward pass of LoadForecaster.

    x:      (B, T, input_size)  -- batch_first=True, like the PyTorch module
    hidden: (h0, c0), each (num_layers=1, B, hidden_size)
    params: dict with w_ih (I,4H), w_hh (H,4H), b (1,4H), w_fc (H,O), b_fc (1,O)
    returns: (output (B, T, O), (h_n (1,B,H), c_n (1,B,H)))
    """
    h0, c0 = hidden
    B, T, I = x.shape
    H = params["w_hh"].shape[0]
    O = params["w_fc"].shape[1]

    # Pad the batch to a full 8-sublane tile so every per-step tile is
    # vreg-aligned (padded rows are sliced away on the way out).
    SUB = 8
    Bp = ((B + SUB - 1) // SUB) * SUB

    # Time-major, batch-padded, flattened so that row t*Bp + b == x[b, t, :].
    x_tbi = jnp.transpose(x, (1, 0, 2))                       # (T, B, I)
    x_tbi = jnp.pad(x_tbi, ((0, 0), (0, Bp - B), (0, 0)))     # (T, Bp, I)
    x2 = x_tbi.reshape(T * Bp, I)

    h0p = jnp.pad(h0[0], ((0, Bp - B), (0, 0)))               # (Bp, H)
    c0p = jnp.pad(c0[0], ((0, Bp - B), (0, 0)))               # (Bp, H)

    kernel = functools.partial(_lstm_fc_kernel, seq_len=T,
                               batch_padded=Bp, hidden=H)

    grid_spec = pltpu.PrefetchScalarGridSpec(
        num_scalar_prefetch=0,
        grid=(1,),  # single invocation; recurrence runs inside the kernel
        in_specs=[
            pl.BlockSpec((T * Bp, I), lambda i: (0, 0)),      # x (all timesteps)
            pl.BlockSpec((I, 4 * H), lambda i: (0, 0)),       # w_ih
            pl.BlockSpec((H, 4 * H), lambda i: (0, 0)),       # w_hh
            pl.BlockSpec((1, 4 * H), lambda i: (0, 0)),       # b (= b_ih + b_hh)
            pl.BlockSpec((H, O), lambda i: (0, 0)),           # fc weight
            pl.BlockSpec((1, O), lambda i: (0, 0)),           # fc bias
            pl.BlockSpec((Bp, H), lambda i: (0, 0)),          # h0 (padded)
            pl.BlockSpec((Bp, H), lambda i: (0, 0)),          # c0 (padded)
        ],
        out_specs=[
            pl.BlockSpec((T * Bp, O), lambda i: (0, 0)),      # y (all timesteps)
            pl.BlockSpec((Bp, H), lambda i: (0, 0)),          # h_n
            pl.BlockSpec((Bp, H), lambda i: (0, 0)),          # c_n
        ],
        scratch_shapes=[pltpu.VMEM((T * Bp, H), jnp.float32)],  # stacked h_t
    )

    y_flat, h_n, c_n = pl.pallas_call(
        kernel,
        out_shape=(
            jax.ShapeDtypeStruct((T * Bp, O), x.dtype),
            jax.ShapeDtypeStruct((Bp, H), x.dtype),
            jax.ShapeDtypeStruct((Bp, H), x.dtype),
        ),
        grid_spec=grid_spec,
        compiler_params=pltpu.CompilerParams(
            dimension_semantics=("arbitrary",),
        ),
    )(x2, params["w_ih"], params["w_hh"], params["b"],
      params["w_fc"], params["b_fc"], h0p, c0p)

    # y_flat[t*Bp + b, o] == output[b, t, o]; drop padded rows, restore layout.
    output = jnp.transpose(y_flat.reshape(T, Bp, O)[:, :B, :], (1, 0, 2))
    return output, (h_n[:B][None], c_n[:B][None])


def _reference_forward(x, hidden, params):
    """Pure-JAX reference (mirrors torch.nn.LSTM + Linear) for validation."""
    h0, c0 = hidden
    H = params["w_hh"].shape[0]

    def step(carry, x_t):
        h, c = carry
        gates = x_t @ params["w_ih"] + h @ params["w_hh"] + params["b"][0]
        i = jax.nn.sigmoid(gates[:, 0 * H:1 * H])
        f = jax.nn.sigmoid(gates[:, 1 * H:2 * H])
        g = jnp.tanh(gates[:, 2 * H:3 * H])
        o = jax.nn.sigmoid(gates[:, 3 * H:4 * H])
        c_new = f * c + i * g
        h_new = o * jnp.tanh(c_new)
        return (h_new, c_new), h_new

    x_tbi = jnp.transpose(x, (1, 0, 2))
    (h_n, c_n), hs = jax.lax.scan(step, (h0[0], c0[0]), x_tbi)
    y = hs @ params["w_fc"] + params["b_fc"][0]
    return jnp.transpose(y, (1, 0, 2)), (h_n[None], c_n[None])


def init_params(key, input_size, hidden_size, output_size):
    """Deterministic parameter init (PyTorch-style U(-1/sqrt(H), 1/sqrt(H)))."""
    ks = jax.random.split(key, 6)
    bound = 1.0 / jnp.sqrt(hidden_size)
    H4 = 4 * hidden_size
    w_ih = jax.random.uniform(ks[0], (input_size, H4), jnp.float32, -bound, bound)
    w_hh = jax.random.uniform(ks[1], (hidden_size, H4), jnp.float32, -bound, bound)
    b_ih = jax.random.uniform(ks[2], (H4,), jnp.float32, -bound, bound)
    b_hh = jax.random.uniform(ks[3], (H4,), jnp.float32, -bound, bound)
    w_fc = jax.random.uniform(ks[4], (hidden_size, output_size), jnp.float32, -bound, bound)
    b_fc = jax.random.uniform(ks[5], (output_size,), jnp.float32, -bound, bound)
    return {
        "w_ih": w_ih,
        "w_hh": w_hh,
        "b": (b_ih + b_hh)[None, :],   # (1, 4H)
        "w_fc": w_fc,
        "b_fc": b_fc[None, :],         # (1, O)
    }


def init_hidden(key, num_layers, batch_size, hidden_size):
    # Mirrors LoadForecaster.init_hidden: zeros for h, randn for c.
    h = jnp.zeros((num_layers, batch_size, hidden_size), jnp.float32)
    c = jax.random.normal(key, (num_layers, batch_size, hidden_size), jnp.float32)
    return h, c


if __name__ == "__main__":
    B, T, I, H, O = 2, 8, 4, 32, 1  # batch, seq, input_size, hidden_size, output_size

    key = jax.random.PRNGKey(0)
    k_params, k_hidden, k_x = jax.random.split(key, 3)

    params = init_params(k_params, I, H, O)
    hidden = init_hidden(k_hidden, 1, B, H)
    x = jax.random.normal(k_x, (B, T, I), jnp.float32)

    out, (h_n, c_n) = load_forecaster_forward(x, hidden, params)
    jax.block_until_ready((out, h_n, c_n))

    # Validate against pure-JAX reference of the same math.
    ref_out, (ref_h, ref_c) = _reference_forward(x, hidden, params)
    assert out.shape == (B, T, O) and h_n.shape == (1, B, H) and c_n.shape == (1, B, H)
    assert jnp.allclose(out, ref_out, atol=1e-5, rtol=1e-5)
    assert jnp.allclose(h_n, ref_h, atol=1e-5, rtol=1e-5)
    assert jnp.allclose(c_n, ref_c, atol=1e-5, rtol=1e-5)

    print("KERNEL_OK")
</pallas_src>

<mosaic_0001>
module attributes {stable_mosaic.version = 11 : i64} {
  func.func @_lstm_fc_kernel(%arg0: i32, %arg1: memref<64x4xf32, #tpu.memory_space<vmem>>, %arg2: memref<4x128xf32, #tpu.memory_space<vmem>>, %arg3: memref<32x128xf32, #tpu.memory_space<vmem>>, %arg4: memref<1x128xf32, #tpu.memory_space<vmem>>, %arg5: memref<32x1xf32, #tpu.memory_space<vmem>>, %arg6: memref<1x1xf32, #tpu.memory_space<vmem>>, %arg7: memref<8x32xf32, #tpu.memory_space<vmem>>, %arg8: memref<8x32xf32, #tpu.memory_space<vmem>>, %arg9: memref<64x1xf32, #tpu.memory_space<vmem>>, %arg10: memref<8x32xf32, #tpu.memory_space<vmem>>, %arg11: memref<8x32xf32, #tpu.memory_space<vmem>>, %arg12: memref<64x32xf32, #tpu.memory_space<vmem>>) attributes {dimension_semantics = [#tpu.dimension_semantics<arbitrary>], iteration_bounds = array<i64: 1>, scalar_prefetch = 0 : i64, scratch_operands = 1 : i64, tpu.core_type = #tpu.core_type<tc>, window_params = [{pipeline_mode = #tpu.pipeline_mode<synchronous>, transform_indices = @transform_0, window_bounds = array<i64: 64, 4>}, {pipeline_mode = #tpu.pipeline_mode<synchronous>, transform_indices = @transform_1, window_bounds = array<i64: 4, 128>}, {pipeline_mode = #tpu.pipeline_mode<synchronous>, transform_indices = @transform_2, window_bounds = array<i64: 32, 128>}, {pipeline_mode = #tpu.pipeline_mode<synchronous>, transform_indices = @transform_3, window_bounds = array<i64: 1, 128>}, {pipeline_mode = #tpu.pipeline_mode<synchronous>, transform_indices = @transform_4, window_bounds = array<i64: 32, 1>}, {pipeline_mode = #tpu.pipeline_mode<synchronous>, transform_indices = @transform_5, window_bounds = array<i64: 1, 1>}, {pipeline_mode = #tpu.pipeline_mode<synchronous>, transform_indices = @transform_6, window_bounds = array<i64: 8, 32>}, {pipeline_mode = #tpu.pipeline_mode<synchronous>, transform_indices = @transform_7, window_bounds = array<i64: 8, 32>}, {pipeline_mode = #tpu.pipeline_mode<synchronous>, transform_indices = @transform_8, window_bounds = array<i64: 64, 1>}, {pipeline_mode = #tpu.pipeline_mode<synchronous>, transform_indices = @transform_9, window_bounds = array<i64: 8, 32>}, {pipeline_mode = #tpu.pipeline_mode<synchronous>, transform_indices = @transform_10, window_bounds = array<i64: 8, 32>}]} {
    %c0 = arith.constant 0 : index
    %c0_0 = arith.constant 0 : index
    %0 = vector.load %arg3[%c0, %c0_0] : memref<32x128xf32, #tpu.memory_space<vmem>>, vector<32x128xf32>
    %c0_1 = arith.constant 0 : index
    %c0_2 = arith.constant 0 : index
    %1 = vector.load %arg1[%c0_1, %c0_2] : memref<64x4xf32, #tpu.memory_space<vmem>>, vector<64x4xf32>
    %c0_3 = arith.constant 0 : index
    %c0_4 = arith.constant 0 : index
    %2 = vector.load %arg2[%c0_3, %c0_4] : memref<4x128xf32, #tpu.memory_space<vmem>>, vector<4x128xf32>
    %cst = arith.constant dense<0.000000e+00> : vector<64x128xf32>
    %3 = tpu.matmul %1, %2, %cst {dimension_numbers = #tpu.dot_dimension_numbers<[1], [0], [0], [1], [0, 0, 1, 1], [], []>} : vector<64x4xf32>, vector<4x128xf32>, vector<64x128xf32> -> vector<64x128xf32>
    %c0_5 = arith.constant 0 : index
    %c0_6 = arith.constant 0 : index
    %4 = vector.load %arg4[%c0_5, %c0_6] : memref<1x128xf32, #tpu.memory_space<vmem>>, vector<1x128xf32>
    %5 = vector.broadcast %4 : vector<1x128xf32> to vector<64x128xf32>
    %6 = arith.addf %3, %5 : vector<64x128xf32>
    %7 = tpu.iota {dimensions = array<i32: 1>} : vector<8x128xi32>
    %c64_i32 = arith.constant 64 : i32
    %8 = vector.broadcast %c64_i32 : i32 to vector<8x128xi32>
    %9 = arith.cmpi sge, %7, %8 : vector<8x128xi32>
    %c96_i32 = arith.constant 96 : i32
    %10 = vector.broadcast %c96_i32 : i32 to vector<8x128xi32>
    %11 = arith.cmpi slt, %7, %10 : vector<8x128xi32>
    %12 = arith.andi %9, %11 : vector<8x128xi1>
    %c0_7 = arith.constant 0 : index
    %c0_8 = arith.constant 0 : index
    %13 = vector.load %arg7[%c0_7, %c0_8] : memref<8x32xf32, #tpu.memory_space<vmem>>, vector<8x32xf32>
    %c0_9 = arith.constant 0 : index
    %c0_10 = arith.constant 0 : index
    %14 = vector.load %arg8[%c0_9, %c0_10] : memref<8x32xf32, #tpu.memory_space<vmem>>, vector<8x32xf32>
    %15 = vector.extract_strided_slice %6 {offsets = [0, 0], sizes = [8, 128], strides = [1, 1]} : vector<64x128xf32> to vector<8x128xf32>
    %cst_11 = arith.constant dense<0.000000e+00> : vector<8x128xf32>
    %16 = tpu.matmul %13, %0, %cst_11 {dimension_numbers = #tpu.dot_dimension_numbers<[1], [0], [0], [1], [0, 0, 1, 1], [], []>} : vector<8x32xf32>, vector<32x128xf32>, vector<8x128xf32> -> vector<8x128xf32>
    %17 = arith.addf %15, %16 : vector<8x128xf32>
    %cst_12 = arith.constant 5.000000e-01 : f32
    %18 = vector.broadcast %cst_12 : f32 to vector<8x128xf32>
    %19 = arith.mulf %18, %17 : vector<8x128xf32>
    %20 = arith.select %12, %17, %19 : vector<8x128xi1>, vector<8x128xf32>
    %21 = math.tanh %20 : vector<8x128xf32>
    %cst_13 = arith.constant 5.000000e-01 : f32
    %22 = vector.broadcast %cst_13 : f32 to vector<8x128xf32>
    %23 = arith.mulf %22, %21 : vector<8x128xf32>
    %cst_14 = arith.constant 5.000000e-01 : f32
    %24 = vector.broadcast %cst_14 : f32 to vector<8x128xf32>
    %25 = arith.addf %23, %24 : vector<8x128xf32>
    %26 = arith.select %12, %21, %25 : vector<8x128xi1>, vector<8x128xf32>
    %27 = vector.extract_strided_slice %26 {offsets = [0, 0], sizes = [8, 32], strides = [1, 1]} : vector<8x128xf32> to vector<8x32xf32>
    %28 = vector.extract_strided_slice %26 {offsets = [0, 32], sizes = [8, 32], strides = [1, 1]} : vector<8x128xf32> to vector<8x32xf32>
    %29 = vector.extract_strided_slice %26 {offsets = [0, 64], sizes = [8, 32], strides = [1, 1]} : vector<8x128xf32> to vector<8x32xf32>
    %30 = vector.extract_strided_slice %26 {offsets = [0, 96], sizes = [8, 32], strides = [1, 1]} : vector<8x128xf32> to vector<8x32xf32>
    %31 = arith.mulf %28, %14 : vector<8x32xf32>
    %32 = arith.mulf %27, %29 : vector<8x32xf32>
    %33 = arith.addf %31, %32 : vector<8x32xf32>
    %34 = math.tanh %33 : vector<8x32xf32>
    %35 = arith.mulf %30, %34 : vector<8x32xf32>
    %c0_15 = arith.constant 0 : index
    %c0_16 = arith.constant 0 : index
    %36 = vector.load %arg12[%c0_15, %c0_16] : memref<64x32xf32, #tpu.memory_space<vmem>>, vector<8x32xf32>
    tpu.vector_store %arg12[%c0_15, %c0_16], %35 {strides = array<i32>} : memref<64x32xf32, #tpu.memory_space<vmem>>, vector<8x32xf32>,
    %37 = vector.extract_strided_slice %6 {offsets = [8, 0], sizes = [8, 128], strides = [1, 1]} : vector<64x128xf32> to vector<8x128xf32>
    %cst_17 = arith.constant dense<0.000000e+00> : vector<8x128xf32>
    %38 = tpu.matmul %35, %0, %cst_17 {dimension_numbers = #tpu.dot_dimension_numbers<[1], [0], [0], [1], [0, 0, 1, 1], [], []>} : vector<8x32xf32>, vector<32x128xf32>, vector<8x128xf32> -> vector<8x128xf32>
    %39 = arith.addf %37, %38 : vector<8x128xf32>
    %cst_18 = arith.constant 5.000000e-01 : f32
    %40 = vector.broadcast %cst_18 : f32 to vector<8x128xf32>
    %41 = arith.mulf %40, %39 : vector<8x128xf32>
    %42 = arith.select %12, %39, %41 : vector<8x128xi1>, vector<8x128xf32>
    %43 = math.tanh %42 : vector<8x128xf32>
    %cst_19 = arith.constant 5.000000e-01 : f32
    %44 = vector.broadcast %cst_19 : f32 to vector<8x128xf32>
    %45 = arith.mulf %44, %43 : vector<8x128xf32>
    %cst_20 = arith.constant 5.000000e-01 : f32
    %46 = vector.broadcast %cst_20 : f32 to vector<8x128xf32>
    %47 = arith.addf %45, %46 : vector<8x128xf32>
    %48 = arith.select %12, %43, %47 : vector<8x128xi1>, vector<8x128xf32>
    %49 = vector.extract_strided_slice %48 {offsets = [0, 0], sizes = [8, 32], strides = [1, 1]} : vector<8x128xf32> to vector<8x32xf32>
    %50 = vector.extract_strided_slice %48 {offsets = [0, 32], sizes = [8, 32], strides = [1, 1]} : vector<8x128xf32> to vector<8x32xf32>
    %51 = vector.extract_strided_slice %48 {offsets = [0, 64], sizes = [8, 32], strides = [1, 1]} : vector<8x128xf32> to vector<8x32xf32>
    %52 = vector.extract_strided_slice %48 {offsets = [0, 96], sizes = [8, 32], strides = [1, 1]} : vector<8x128xf32> to vector<8x32xf32>
    %53 = arith.mulf %50, %33 : vector<8x32xf32>
    %54 = arith.mulf %49, %51 : vector<8x32xf32>
    %55 = arith.addf %53, %54 : vector<8x32xf32>
    %56 = math.tanh %55 : vector<8x32xf32>
    %57 = arith.mulf %52, %56 : vector<8x32xf32>
    %c8 = arith.constant 8 : index
    %c0_21 = arith.constant 0 : index
    %58 = vector.load %arg12[%c8, %c0_21] : memref<64x32xf32, #tpu.memory_space<vmem>>, vector<8x32xf32>
    tpu.vector_store %arg12[%c8, %c0_21], %57 {strides = array<i32>} : memref<64x32xf32, #tpu.memory_space<vmem>>, vector<8x32xf32>,
    %59 = vector.extract_strided_slice %6 {offsets = [16, 0], sizes = [8, 128], strides = [1, 1]} : vector<64x128xf32> to vector<8x128xf32>
    %cst_22 = arith.constant dense<0.000000e+00> : vector<8x128xf32>
    %60 = tpu.matmul %57, %0, %cst_22 {dimension_numbers = #tpu.dot_dimension_numbers<[1], [0], [0], [1], [0, 0, 1, 1], [], []>} : vector<8x32xf32>, vector<32x128xf32>, vector<8x128xf32> -> vector<8x128xf32>
    %61 = arith.addf %59, %60 : vector<8x128xf32>
    %cst_23 = arith.constant 5.000000e-01 : f32
    %62 = vector.broadcast %cst_23 : f32 to vector<8x128xf32>
    %63 = arith.mulf %62, %61 : vector<8x128xf32>
    %64 = arith.select %12, %61, %63 : vector<8x128xi1>, vector<8x128xf32>
    %65 = math.tanh %64 : vector<8x128xf32>
    %cst_24 = arith.constant 5.000000e-01 : f32
    %66 = vector.broadcast %cst_24 : f32 to vector<8x128xf32>
    %67 = arith.mulf %66, %65 : vector<8x128xf32>
    %cst_25 = arith.constant 5.000000e-01 : f32
    %68 = vector.broadcast %cst_25 : f32 to vector<8x128xf32>
    %69 = arith.addf %67, %68 : vector<8x128xf32>
    %70 = arith.select %12, %65, %69 : vector<8x128xi1>, vector<8x128xf32>
    %71 = vector.extract_strided_slice %70 {offsets = [0, 0], sizes = [8, 32], strides = [1, 1]} : vector<8x128xf32> to vector<8x32xf32>
    %72 = vector.extract_strided_slice %70 {offsets = [0, 32], sizes = [8, 32], strides = [1, 1]} : vector<8x128xf32> to vector<8x32xf32>
    %73 = vector.extract_strided_slice %70 {offsets = [0, 64], sizes = [8, 32], strides = [1, 1]} : vector<8x128xf32> to vector<8x32xf32>
    %74 = vector.extract_strided_slice %70 {offsets = [0, 96], sizes = [8, 32], strides = [1, 1]} : vector<8x128xf32> to vector<8x32xf32>
    %75 = arith.mulf %72, %55 : vector<8x32xf32>
    %76 = arith.mulf %71, %73 : vector<8x32xf32>
    %77 = arith.addf %75, %76 : vector<8x32xf32>
    %78 = math.tanh %77 : vector<8x32xf32>
    %79 = arith.mulf %74, %78 : vector<8x32xf32>
    %c16 = arith.constant 16 : index
    %c0_26 = arith.constant 0 : index
    %80 = vector.load %arg12[%c16, %c0_26] : memref<64x32xf32, #tpu.memory_space<vmem>>, vector<8x32xf32>
    tpu.vector_store %arg12[%c16, %c0_26], %79 {strides = array<i32>} : memref<64x32xf32, #tpu.memory_space<vmem>>, vector<8x32xf32>,
    %81 = vector.extract_strided_slice %6 {offsets = [24, 0], sizes = [8, 128], strides = [1, 1]} : vector<64x128xf32> to vector<8x128xf32>
    %cst_27 = arith.constant dense<0.000000e+00> : vector<8x128xf32>
    %82 = tpu.matmul %79, %0, %cst_27 {dimension_numbers = #tpu.dot_dimension_numbers<[1], [0], [0], [1], [0, 0, 1, 1], [], []>} : vector<8x32xf32>, vector<32x128xf32>, vector<8x128xf32> -> vector<8x128xf32>
    %83 = arith.addf %81, %82 : vector<8x128xf32>
    %cst_28 = arith.constant 5.000000e-01 : f32
    %84 = vector.broadcast %cst_28 : f32 to vector<8x128xf32>
    %85 = arith.mulf %84, %83 : vector<8x128xf32>
    %86 = arith.select %12, %83, %85 : vector<8x128xi1>, vector<8x128xf32>
    %87 = math.tanh %86 : vector<8x128xf32>
    %cst_29 = arith.constant 5.000000e-01 : f32
    %88 = vector.broadcast %cst_29 : f32 to vector<8x128xf32>
    %89 = arith.mulf %88, %87 : vector<8x128xf32>
    %cst_30 = arith.constant 5.000000e-01 : f32
    %90 = vector.broadcast %cst_30 : f32 to vector<8x128xf32>
    %91 = arith.addf %89, %90 : vector<8x128xf32>
    %92 = arith.select %12, %87, %91 : vector<8x128xi1>, vector<8x128xf32>
    %93 = vector.extract_strided_slice %92 {offsets = [0, 0], sizes = [8, 32], strides = [1, 1]} : vector<8x128xf32> to vector<8x32xf32>
    %94 = vector.extract_strided_slice %92 {offsets = [0, 32], sizes = [8, 32], strides = [1, 1]} : vector<8x128xf32> to vector<8x32xf32>
    %95 = vector.extract_strided_slice %92 {offsets = [0, 64], sizes = [8, 32], strides = [1, 1]} : vector<8x128xf32> to vector<8x32xf32>
    %96 = vector.extract_strided_slice %92 {offsets = [0, 96], sizes = [8, 32], strides = [1, 1]} : vector<8x128xf32> to vector<8x32xf32>
    %97 = arith.mulf %94, %77 : vector<8x32xf32>
    %98 = arith.mulf %93, %95 : vector<8x32xf32>
    %99 = arith.addf %97, %98 : vector<8x32xf32>
    %100 = math.tanh %99 : vector<8x32xf32>
    %101 = arith.mulf %96, %100 : vector<8x32xf32>
    %c24 = arith.constant 24 : index
    %c0_31 = arith.constant 0 : index
    %102 = vector.load %arg12[%c24, %c0_31] : memref<64x32xf32, #tpu.memory_space<vmem>>, vector<8x32xf32>
    tpu.vector_store %arg12[%c24, %c0_31], %101 {strides = array<i32>} : memref<64x32xf32, #tpu.memory_space<vmem>>, vector<8x32xf32>,
    %103 = vector.extract_strided_slice %6 {offsets = [32, 0], sizes = [8, 128], strides = [1, 1]} : vector<64x128xf32> to vector<8x128xf32>
    %cst_32 = arith.constant dense<0.000000e+00> : vector<8x128xf32>
    %104 = tpu.matmul %101, %0, %cst_32 {dimension_numbers = #tpu.dot_dimension_numbers<[1], [0], [0], [1], [0, 0, 1, 1], [], []>} : vector<8x32xf32>, vector<32x128xf32>, vector<8x128xf32> -> vector<8x128xf32>
    %105 = arith.addf %103, %104 : vector<8x128xf32>
    %cst_33 = arith.constant 5.000000e-01 : f32
    %106 = vector.broadcast %cst_33 : f32 to vector<8x128xf32>
    %107 = arith.mulf %106, %105 : vector<8x128xf32>
    %108 = arith.select %12, %105, %107 : vector<8x128xi1>, vector<8x128xf32>
    %109 = math.tanh %108 : vector<8x128xf32>
    %cst_34 = arith.constant 5.000000e-01 : f32
    %110 = vector.broadcast %cst_34 : f32 to vector<8x128xf32>
    %111 = arith.mulf %110, %109 : vector<8x128xf32>
    %cst_35 = arith.constant 5.000000e-01 : f32
    %112 = vector.broadcast %cst_35 : f32 to vector<8x128xf32>
    %113 = arith.addf %111, %112 : vector<8x128xf32>
    %114 = arith.select %12, %109, %113 : vector<8x128xi1>, vector<8x128xf32>
    %115 = vector.extract_strided_slice %114 {offsets = [0, 0], sizes = [8, 32], strides = [1, 1]} : vector<8x128xf32> to vector<8x32xf32>
    %116 = vector.extract_strided_slice %114 {offsets = [0, 32], sizes = [8, 32], strides = [1, 1]} : vector<8x128xf32> to vector<8x32xf32>
    %117 = vector.extract_strided_slice %114 {offsets = [0, 64], sizes = [8, 32], strides = [1, 1]} : vector<8x128xf32> to vector<8x32xf32>
    %118 = vector.extract_strided_slice %114 {offsets = [0, 96], sizes = [8, 32], strides = [1, 1]} : vector<8x128xf32> to vector<8x32xf32>
    %119 = arith.mulf %116, %99 : vector<8x32xf32>
    %120 = arith.mulf %115, %117 : vector<8x32xf32>
    %121 = arith.addf %119, %120 : vector<8x32xf32>
    %122 = math.tanh %121 : vector<8x32xf32>
    %123 = arith.mulf %118, %122 : vector<8x32xf32>
    %c32 = arith.constant 32 : index
    %c0_36 = arith.constant 0 : index
    %124 = vector.load %arg12[%c32, %c0_36] : memref<64x32xf32, #tpu.memory_space<vmem>>, vector<8x32xf32>
    tpu.vector_store %arg12[%c32, %c0_36], %123 {strides = array<i32>} : memref<64x32xf32, #tpu.memory_space<vmem>>, vector<8x32xf32>,
    %125 = vector.extract_strided_slice %6 {offsets = [40, 0], sizes = [8, 128], strides = [1, 1]} : vector<64x128xf32> to vector<8x128xf32>
    %cst_37 = arith.constant dense<0.000000e+00> : vector<8x128xf32>
    %126 = tpu.matmul %123, %0, %cst_37 {dimension_numbers = #tpu.dot_dimension_numbers<[1], [0], [0], [1], [0, 0, 1, 1], [], []>} : vector<8x32xf32>, vector<32x128xf32>, vector<8x128xf32> -> vector<8x128xf32>
    %127 = arith.addf %125, %126 : vector<8x128xf32>
    %cst_38 = arith.constant 5.000000e-01 : f32
    %128 = vector.broadcast %cst_38 : f32 to vector<8x128xf32>
    %129 = arith.mulf %128, %127 : vector<8x128xf32>
    %130 = arith.select %12, %127, %129 : vector<8x128xi1>, vector<8x128xf32>
    %131 = math.tanh %130 : vector<8x128xf32>
    %cst_39 = arith.constant 5.000000e-01 : f32
    %132 = vector.broadcast %cst_39 : f32 to vector<8x128xf32>
    %133 = arith.mulf %132, %131 : vector<8x128xf32>
    %cst_40 = arith.constant 5.000000e-01 : f32
    %134 = vector.broadcast %cst_40 : f32 to vector<8x128xf32>
    %135 = arith.addf %133, %134 : vector<8x128xf32>
    %136 = arith.select %12, %131, %135 : vector<8x128xi1>, vector<8x128xf32>
    %137 = vector.extract_strided_slice %136 {offsets = [0, 0], sizes = [8, 32], strides = [1, 1]} : vector<8x128xf32> to vector<8x32xf32>
    %138 = vector.extract_strided_slice %136 {offsets = [0, 32], sizes = [8, 32], strides = [1, 1]} : vector<8x128xf32> to vector<8x32xf32>
    %139 = vector.extract_strided_slice %136 {offsets = [0, 64], sizes = [8, 32], strides = [1, 1]} : vector<8x128xf32> to vector<8x32xf32>
    %140 = vector.extract_strided_slice %136 {offsets = [0, 96], sizes = [8, 32], strides = [1, 1]} : vector<8x128xf32> to vector<8x32xf32>
    %141 = arith.mulf %138, %121 : vector<8x32xf32>
    %142 = arith.mulf %137, %139 : vector<8x32xf32>
    %143 = arith.addf %141, %142 : vector<8x32xf32>
    %144 = math.tanh %143 : vector<8x32xf32>
    %145 = arith.mulf %140, %144 : vector<8x32xf32>
    %c40 = arith.constant 40 : index
    %c0_41 = arith.constant 0 : index
    %146 = vector.load %arg12[%c40, %c0_41] : memref<64x32xf32, #tpu.memory_space<vmem>>, vector<8x32xf32>
    tpu.vector_store %arg12[%c40, %c0_41], %145 {strides = array<i32>} : memref<64x32xf32, #tpu.memory_space<vmem>>, vector<8x32xf32>,
    %147 = vector.extract_strided_slice %6 {offsets = [48, 0], sizes = [8, 128], strides = [1, 1]} : vector<64x128xf32> to vector<8x128xf32>
    %cst_42 = arith.constant dense<0.000000e+00> : vector<8x128xf32>
    %148 = tpu.matmul %145, %0, %cst_42 {dimension_numbers = #tpu.dot_dimension_numbers<[1], [0], [0], [1], [0, 0, 1, 1], [], []>} : vector<8x32xf32>, vector<32x128xf32>, vector<8x128xf32> -> vector<8x128xf32>
    %149 = arith.addf %147, %148 : vector<8x128xf32>
    %cst_43 = arith.constant 5.000000e-01 : f32
    %150 = vector.broadcast %cst_43 : f32 to vector<8x128xf32>
    %151 = arith.mulf %150, %149 : vector<8x128xf32>
    %152 = arith.select %12, %149, %151 : vector<8x128xi1>, vector<8x128xf32>
    %153 = math.tanh %152 : vector<8x128xf32>
    %cst_44 = arith.constant 5.000000e-01 : f32
    %154 = vector.broadcast %cst_44 : f32 to vector<8x128xf32>
    %155 = arith.mulf %154, %153 : vector<8x128xf32>
    %cst_45 = arith.constant 5.000000e-01 : f32
    %156 = vector.broadcast %cst_45 : f32 to vector<8x128xf32>
    %157 = arith.addf %155, %156 : vector<8x128xf32>
    %158 = arith.select %12, %153, %157 : vector<8x128xi1>, vector<8x128xf32>
    %159 = vector.extract_strided_slice %158 {offsets = [0, 0], sizes = [8, 32], strides = [1, 1]} : vector<8x128xf32> to vector<8x32xf32>
    %160 = vector.extract_strided_slice %158 {offsets = [0, 32], sizes = [8, 32], strides = [1, 1]} : vector<8x128xf32> to vector<8x32xf32>
    %161 = vector.extract_strided_slice %158 {offsets = [0, 64], sizes = [8, 32], strides = [1, 1]} : vector<8x128xf32> to vector<8x32xf32>
    %162 = vector.extract_strided_slice %158 {offsets = [0, 96], sizes = [8, 32], strides = [1, 1]} : vector<8x128xf32> to vector<8x32xf32>
    %163 = arith.mulf %160, %143 : vector<8x32xf32>
    %164 = arith.mulf %159, %161 : vector<8x32xf32>
    %165 = arith.addf %163, %164 : vector<8x32xf32>
    %166 = math.tanh %165 : vector<8x32xf32>
    %167 = arith.mulf %162, %166 : vector<8x32xf32>
    %c48 = arith.constant 48 : index
    %c0_46 = arith.constant 0 : index
    %168 = vector.load %arg12[%c48, %c0_46] : memref<64x32xf32, #tpu.memory_space<vmem>>, vector<8x32xf32>
    tpu.vector_store %arg12[%c48, %c0_46], %167 {strides = array<i32>} : memref<64x32xf32, #tpu.memory_space<vmem>>, vector<8x32xf32>,
    %169 = vector.extract_strided_slice %6 {offsets = [56, 0], sizes = [8, 128], strides = [1, 1]} : vector<64x128xf32> to vector<8x128xf32>
    %cst_47 = arith.constant dense<0.000000e+00> : vector<8x128xf32>
    %170 = tpu.matmul %167, %0, %cst_47 {dimension_numbers = #tpu.dot_dimension_numbers<[1], [0], [0], [1], [0, 0, 1, 1], [], []>} : vector<8x32xf32>, vector<32x128xf32>, vector<8x128xf32> -> vector<8x128xf32>
    %171 = arith.addf %169, %170 : vector<8x128xf32>
    %cst_48 = arith.constant 5.000000e-01 : f32
    %172 = vector.broadcast %cst_48 : f32 to vector<8x128xf32>
    %173 = arith.mulf %172, %171 : vector<8x128xf32>
    %174 = arith.select %12, %171, %173 : vector<8x128xi1>, vector<8x128xf32>
    %175 = math.tanh %174 : vector<8x128xf32>
    %cst_49 = arith.constant 5.000000e-01 : f32
    %176 = vector.broadcast %cst_49 : f32 to vector<8x128xf32>
    %177 = arith.mulf %176, %175 : vector<8x128xf32>
    %cst_50 = arith.constant 5.000000e-01 : f32
    %178 = vector.broadcast %cst_50 : f32 to vector<8x128xf32>
    %179 = arith.addf %177, %178 : vector<8x128xf32>
    %180 = arith.select %12, %175, %179 : vector<8x128xi1>, vector<8x128xf32>
    %181 = vector.extract_strided_slice %180 {offsets = [0, 0], sizes = [8, 32], strides = [1, 1]} : vector<8x128xf32> to vector<8x32xf32>
    %182 = vector.extract_strided_slice %180 {offsets = [0, 32], sizes = [8, 32], strides = [1, 1]} : vector<8x128xf32> to vector<8x32xf32>
    %183 = vector.extract_strided_slice %180 {offsets = [0, 64], sizes = [8, 32], strides = [1, 1]} : vector<8x128xf32> to vector<8x32xf32>
    %184 = vector.extract_strided_slice %180 {offsets = [0, 96], sizes = [8, 32], strides = [1, 1]} : vector<8x128xf32> to vector<8x32xf32>
    %185 = arith.mulf %182, %165 : vector<8x32xf32>
    %186 = arith.mulf %181, %183 : vector<8x32xf32>
    %187 = arith.addf %185, %186 : vector<8x32xf32>
    %188 = math.tanh %187 : vector<8x32xf32>
    %189 = arith.mulf %184, %188 : vector<8x32xf32>
    %c56 = arith.constant 56 : index
    %c0_51 = arith.constant 0 : index
    %190 = vector.load %arg12[%c56, %c0_51] : memref<64x32xf32, #tpu.memory_space<vmem>>, vector<8x32xf32>
    tpu.vector_store %arg12[%c56, %c0_51], %189 {strides = array<i32>} : memref<64x32xf32, #tpu.memory_space<vmem>>, vector<8x32xf32>,
    %c0_52 = arith.constant 0 : index
    %c0_53 = arith.constant 0 : index
    %191 = vector.load %arg12[%c0_52, %c0_53] : memref<64x32xf32, #tpu.memory_space<vmem>>, vector<64x32xf32>
    %c0_54 = arith.constant 0 : index
    %c0_55 = arith.constant 0 : index
    %192 = vector.load %arg5[%c0_54, %c0_55] : memref<32x1xf32, #tpu.memory_space<vmem>>, vector<32x1xf32>
    %cst_56 = arith.constant dense<0.000000e+00> : vector<64x1xf32>
    %193 = tpu.matmul %191, %192, %cst_56 {dimension_numbers = #tpu.dot_dimension_numbers<[1], [0], [0], [1], [0, 0, 1, 1], [], []>} : vector<64x32xf32>, vector<32x1xf32>, vector<64x1xf32> -> vector<64x1xf32>
    %c0_57 = arith.constant 0 : index
    %c0_58 = arith.constant 0 : index
    %194 = vector.load %arg6[%c0_57, %c0_58] : memref<1x1xf32, #tpu.memory_space<vmem>>, vector<1x1xf32>
    %195 = vector.broadcast %194 : vector<1x1xf32> to vector<64x1xf32>
    %196 = arith.addf %193, %195 : vector<64x1xf32>
    %c0_59 = arith.constant 0 : index
    %c0_60 = arith.constant 0 : index
    %197 = vector.load %arg9[%c0_59, %c0_60] : memref<64x1xf32, #tpu.memory_space<vmem>>, vector<64x1xf32>
    tpu.vector_store %arg9[%c0_59, %c0_60], %196 {strides = array<i32>} : memref<64x1xf32, #tpu.memory_space<vmem>>, vector<64x1xf32>,
    %c0_61 = arith.constant 0 : index
    %c0_62 = arith.constant 0 : index
    %198 = vector.load %arg10[%c0_61, %c0_62] : memref<8x32xf32, #tpu.memory_space<vmem>>, vector<8x32xf32>
    tpu.vector_store %arg10[%c0_61, %c0_62], %189 {strides = array<i32>} : memref<8x32xf32, #tpu.memory_space<vmem>>, vector<8x32xf32>,
    %c0_63 = arith.constant 0 : index
    %c0_64 = arith.constant 0 : index
    %199 = vector.load %arg11[%c0_63, %c0_64] : memref<8x32xf32, #tpu.memory_space<vmem>>, vector<8x32xf32>
    tpu.vector_store %arg11[%c0_63, %c0_64], %187 {strides = array<i32>} : memref<8x32xf32, #tpu.memory_space<vmem>>, vector<8x32xf32>,
    return
  }
  func.func @transform_0(%arg0: i32) -> (i32, i32) {
    %c0_i32 = arith.constant 0 : i32
    %c0_i32_0 = arith.constant 0 : i32
    %c0_i32_1 = arith.constant 0 : i32
    return %c0_i32, %c0_i32_0 : i32, i32
  }
  func.func @transform_1(%arg0: i32) -> (i32, i32) {
    %c0_i32 = arith.constant 0 : i32
    %c0_i32_0 = arith.constant 0 : i32
    %c0_i32_1 = arith.constant 0 : i32
    return %c0_i32, %c0_i32_0 : i32, i32
  }
  func.func @transform_2(%arg0: i32) -> (i32, i32) {
    %c0_i32 = arith.constant 0 : i32
    %c0_i32_0 = arith.constant 0 : i32
    %c0_i32_1 = arith.constant 0 : i32
    return %c0_i32, %c0_i32_0 : i32, i32
  }
  func.func @transform_3(%arg0: i32) -> (i32, i32) {
    %c0_i32 = arith.constant 0 : i32
    %c0_i32_0 = arith.constant 0 : i32
    %c0_i32_1 = arith.constant 0 : i32
    return %c0_i32, %c0_i32_0 : i32, i32
  }
  func.func @transform_4(%arg0: i32) -> (i32, i32) {
    %c0_i32 = arith.constant 0 : i32
    %c0_i32_0 = arith.constant 0 : i32
    %c0_i32_1 = arith.constant 0 : i32
    return %c0_i32, %c0_i32_0 : i32, i32
  }
  func.func @transform_5(%arg0: i32) -> (i32, i32) {
    %c0_i32 = arith.constant 0 : i32
    %c0_i32_0 = arith.constant 0 : i32
    %c0_i32_1 = arith.constant 0 : i32
    return %c0_i32, %c0_i32_0 : i32, i32
  }
  func.func @transform_6(%arg0: i32) -> (i32, i32) {
    %c0_i32 = arith.constant 0 : i32
    %c0_i32_0 = arith.constant 0 : i32
    %c0_i32_1 = arith.constant 0 : i32
    return %c0_i32, %c0_i32_0 : i32, i32
  }
  func.func @transform_7(%arg0: i32) -> (i32, i32) {
    %c0_i32 = arith.constant 0 : i32
    %c0_i32_0 = arith.constant 0 : i32
    %c0_i32_1 = arith.constant 0 : i32
    return %c0_i32, %c0_i32_0 : i32, i32
  }
  func.func @transform_8(%arg0: i32) -> (i32, i32) {
    %c0_i32 = arith.constant 0 : i32
    %c0_i32_0 = arith.constant 0 : i32
    %c0_i32_1 = arith.constant 0 : i32
    return %c0_i32, %c0_i32_0 : i32, i32
  }
  func.func @transform_9(%arg0: i32) -> (i32, i32) {
    %c0_i32 = arith.constant 0 : i32
    %c0_i32_0 = arith.constant 0 : i32
    %c0_i32_1 = arith.constant 0 : i32
    return %c0_i32, %c0_i32_0 : i32, i32
  }
  func.func @transform_10(%arg0: i32) -> (i32, i32) {
    %c0_i32 = arith.constant 0 : i32
    %c0_i32_0 = arith.constant 0 : i32
    %c0_i32_1 = arith.constant 0 : i32
    return %c0_i32, %c0_i32_0 : i32, i32
  }
}

</mosaic_0001>

<bundles_post_ra>
// kernel: tpu_custom_call.1
= control target key start
LH: loop header
LB: loop body
LE: loop exit
PB: predicated region body
PF: predicated region fallthrough
CT: control target
= control target key end

     0   :  { %s1939_s0 = inlined_call_operand.vmem [shape: f32[64,4], index: 0, kind: input, shape index: {}]   ;;  %s1940_s1 = inlined_call_operand.vmem [shape: f32[4,128], index: 1, kind: input, shape index: {}]   ;;  %s1941_s2 = inlined_call_operand.vmem [shape: f32[32,128], index: 2, kind: input, shape index: {}]   ;;  %s1942_s3 = inlined_call_operand.vmem [shape: f32[1,128], index: 3, kind: input, shape index: {}]   ;;  %s1943_s4 = inlined_call_operand.vmem [shape: f32[32,1], index: 4, kind: input, shape index: {}]   ;;  %s1944_s5 = inlined_call_operand.<no memory space> [shape: f32[1,1], index: 5, kind: input, shape index: {}]   ;;  %s1945_s6 = inlined_call_operand.vmem [shape: f32[8,32], index: 6, kind: input, shape index: {}]   ;;  %s1946_s7 = inlined_call_operand.vmem [shape: f32[8,32], index: 7, kind: input, shape index: {}]   ;;  %s1947_s8 = inlined_call_operand.vmem [shape: f32[64,1], index: 8, kind: output, shape index: {0}]   ;;  %s1948_s9 = inlined_call_operand.hbm [shape: f32[8,32], index: 9, kind: output, shape index: {1}]   ;;  %s1949_s10 = inlined_call_operand.hbm [shape: f32[8,32], index: 10, kind: output, shape index: {2}]  }
   0x1   :  { %v16_v0 = vstv %s1944_s5 }
   0x2   :  { %17 = vst [vmem:[#allocation3] sm:$0x1] %v16_v0 }
   0x3   :  { %18 = vsyncpa [#allocation5], 0  ;;  %v48_v1 = vld [vmem:[%s1940_s1] sm:$0xf]  ;;  %vm81_vm0 = vcmask 1043456   ;;  %vm56_vm1 = vcmask 31744  }
   0x4   :  { %v44_v2 = vld [vmem:[%s1939_s0 + $0x20] sm:$0xff]  ;;  %v45_v3 = vld [vmem:[%s1939_s0 + $0x28] sm:$0xff]  ;;  %1472 = vmatprep.subr.msk.mxu1 %vm81_vm0, %v48_v1  ;;  %v46_v6 = vld [vmem:[%s1939_s0 + $0x30] sm:$0xff]  ;;  %1294 = vmatprep.subr.msk.mxu0 %vm81_vm0, %v48_v1  ;;  %v1562_v9 = vmov 0.0|0.0  }
   0x5   :  { %1302 = vmatprep.mubr.msk.f32.mxu1 %vm56_vm1, %v44_v2  ;;  %v36_v4 = vld [vmem:[%s1941_s2] sm:$0xff]  ;;  %v37_v5 = vld [vmem:[%s1941_s2 + $0x8] sm:$0xff]  ;;  %1473 = vmatpush3.msk.msra.mxu1 %vm81_vm0, %v48_v1  ;;  %v38_v11 = vld [vmem:[%s1941_s2 + $0x10] sm:$0xff] }
   0x6   :  { %v1649_v7 = vpack.c.bf16 %v37_v5, %v36_v4  ;;  %v40_v8 = vld [vmem:[%s1939_s0] sm:$0xff]  ;;  %1303 = vmatmul.mubr.msk.f32.vlgmr.msra.gmra.mrb[0].mxu1 %vm56_vm1, %v45_v3  ;;  %1416 = vmatprep.subr.bf16.mxu1 %v1562_v9  ;;  %v41_v10 = vld [vmem:[%s1939_s0 + $0x8] sm:$0xff]  ;;  %v39_v12 = vld [vmem:[%s1941_s2 + $0x18] sm:$0xff] }
   0x7   :  { %1305 = vmatprep.mubr.msk.f32.mxu1 %vm56_vm1, %v46_v6  ;;  %v47_v13 = vld [vmem:[%s1939_s0 + $0x38] sm:$0xff]  ;;  %v1671_v14 = vpack.c.bf16 %v39_v12, %v38_v11 }
   0x8   :  { %1418 = vmatpush3.bf16.msra.mxu1 %v1649_v7 }
   0x9   :  { %19 = vsyncpa [#allocation7], 0  ;;  %1295 = vmatpush3.msk.msra.mxu0 %vm81_vm0, %v48_v1  ;;  %1296 = vmatprep.mubr.msk.f32.mxu0 %vm56_vm1, %v40_v8  ;;  %vm1563_vm2 = vmmov 0   ;;  %v1564_v15 = vmov 0.0   ;;  %v195_v16 = vld [vmem:[%s1945_s6] sm:$0xff]  ;;  %vm197_vm3 = vcmask 261120   ;;  %v190_v17 = vlaneseq }
   0xa   :  { %1419 = vmatprep.subr.bf16.mxu1 %v1562_v9  ;;  %1297 = vmatmul.mubr.msk.f32.vlgmr.msra.gmra.mrb[0].mxu0 %vm56_vm1, %v41_v10  ;;  %v1704_v22 = vld [vmem:[%s1942_s3] ss:$0 sm:$0xff]  ;;  %s1565_s3 = smov 64   ;;  %s1566_s19 = smov 32   ;;  %v42_v63 = vld [vmem:[%s1939_s0 + $0x10] sm:$0xff]  ;;  %v43_v0 = vld [vmem:[%s1939_s0 + $0x18] sm:$0xff] }
   0xb   :  { %1306 = vmatmul.mubr.msk.f32.gmra.mrb[2].mxu1 %vm56_vm1, %v47_v13  ;;  %1428 = vmatprep.subr.bf16.mxu0 %v1562_v9  ;;  %v191_v21 = vand.u32 127, %v190_v17  ;;  %v196_v37 = vld [vmem:[%s1946_s7] sm:$0xff]  ;;  %vm1159_vm7 = vcmask 7168   ;;  %s1567_s17 = smov 96   ;;  %s1568_s18 = smov [#allocation4]  }
   0xc   :  { %1421 = vmatpush3.bf16.msra.mxu1 %v1671_v14  ;;  %1316 = vmatprep.mubr.msk.f32.mxu1 %vm1563_vm2, %v1564_v15  ;;  %s1182_s7 = sshll.u32 %s1568_s18, 4  ;;  %s1183_s7 = int_to_ptr.vmem [resolvable:$true] %s1182_s7 }
   0xd   :  { %1422 = vmatprep.subr.bf16.mxu1 %v1562_v9  ;;  %1430 = vmatpush3.bf16.msra.mxu0 %v1649_v7  ;;  %vm192_vm4 = vcmp.ge.s32.totalorder %v191_v21, 64  ;;  %vm193_vm5 = vcmp.lt.s32.totalorder %v191_v21, 96  ;;  %s1514_s5 = scalar_lea.vmem %s1183_s7, 128  ;;  %p1519_p1 = scmp.lt.s32.totalorder %s1183_s7, %s1183_s7 }
   0xe   :  { %1431 = vmatprep.subr.bf16.mxu0 %v1562_v9  ;;  %vm1711_vm6 = vmand %vm192_vm4, %vm193_vm5  ;;  %1299 = vmatprep.mubr.msk.f32.mxu0 %vm56_vm1, %v42_v63  ;;  %p1515_p0 = scmp.ne.s32.totalorder %s1183_s7, %s1514_s5  ;;  %p1520_p2 = scmp.lt.s32.totalorder %s1514_s5, %s1514_s5 }
   0xf   :  { %1317 = vmatmul.mubr.msk.f32.vlgmr.msra.gmra.mrb[4].mxu1 %vm197_vm3, %v195_v16  ;;  %1300 = vmatmul.mubr.msk.f32.gmra.mrb[2].mxu0 %vm56_vm1, %v43_v0 }
  0x10   :  { %1424 = vmatpush3.bf16.msra.mxu1 %v1649_v7  ;;  %1327 = vmatprep.mubr.msk.f32.mxu1 %vm1563_vm2, %v1564_v15  ;;  %p1521_p3 = por %p1520_p2, %p1519_p1 }
  0x11   :  { %1425 = vmatprep.subr.bf16.mxu1 %v1562_v9  ;;  %1433 = vmatpush3.bf16.msra.mxu0 %v1671_v14 }
  0x12   :  { %1440 = vmatprep.subr.bf16.mxu0 %v1562_v9  ;;  %1338 = vmatprep.mubr.msk.f32.mxu0 %vm1563_vm2, %v1564_v15  ;;  %p1522_p4 = pnand %p1521_p3, %p1515_p0 }
  0x14   :  { %1427 = vmatpush3.bf16.msra.mxu1 %v1671_v14 }
  0x15   :  { %1434 = vmatprep.subr.bf16.mxu1 %v1562_v9 }
  0xd9   :  { %v1697_v18 = vpop.f32.mrb[0].mxu1 }
  0xda   :  { %v1699_v19 = vpop.f32.mrb[1].mxu1 }
  0xdd   :  { %v1298_v20 = vpop.f32.mrb[0].mxu0 }
  0xde   :  { %v1706_v23 = vpop.f32.mrb[2].mxu1  ;;  %v151_v24 = vpop.f32.mrb[1].mxu0  ;;  %v157_v48 = vadd.f32 %v1298_v20, %v1704_v22 }
  0xdf   :  { %v1708_v25 = vpop.f32.mrb[3].mxu1  ;;  %v152_v26 = vadd.f32 %v1704_v22, %v151_v24 }
  0xe2   :  { %v267_v27 = vpop.f32.mrb[4].mxu1  ;;  %v1301_v4 = vpop.f32.mrb[2].mxu0 }
  0xe3   :  { %v271_v28 = vadd.f32 %v267_v27, %v152_v26  ;;  %v1318_v29 = vpop.f32.mrb[5].mxu1  ;;  %v161_v5 = vpop.f32.mrb[3].mxu0 }
  0xe4   :  { %v162_v8 = vadd.f32 %v1704_v22, %v161_v5 }
  0xe5   :  { %v272_v31 = vmul.f32 0.5, %v271_v28 }
  0xe7   :  { %v273_v32 = vsel %vm1711_vm6, %v271_v28, %v272_v31 }
  0xe8   :  { %1482 = vtanh.f32 %v273_v32 }
  0xf2   :  { %v1483_v33 = vpop.eup %1482 }
  0xf3   :  { %v275_v34 = vmul.f32 0.5, %v1483_v33 }
  0xf5   :  { %v276_v35 = vadd.f32 0.5, %v275_v34 }
  0xf7   :  { %v277_v36 = vsel %vm1711_vm6, %v1483_v33, %v276_v35 }
  0xf8   :  { %284 = vrot.lane.b32.xlu0 %v277_v36, %s1565_s3 }
  0xfc   :  { %279 = vrot.lane.b32.xlu0 %v196_v37, %s1566_s19 }
 0x16a   :  { %v285_v38 = vpop.permute.xlu0 %284 }
 0x16b   :  { %v287_v39 = vmul.f32 %v285_v38, %v277_v36 }
 0x16d   :  { %289 = vrot.lane.b32.xlu1 %v287_v39, %s1566_s19 }
 0x16e   :  { %v280_v40 = vpop.permute.xlu0 %279 }
 0x16f   :  { %v282_v41 = vmul.f32 %v280_v40, %v277_v36 }
 0x1df   :  { %v290_v42 = vpop.permute.xlu1 %289 }
 0x1e0   :  { %v292_v43 = vadd.f32 %v290_v42, %v282_v41 }
 0x1e2   :  { %1484 = vtanh.f32 %v292_v43 }
 0x1ec   :  { %v1485_v44 = vpop.eup %1484 }
 0x1ed   :  { %295 = vrot.lane.b32.xlu1 %v1485_v44, %s1565_s3 }
 0x25f   :  { %v296_v45 = vpop.permute.xlu1 %295 }
 0x260   :  { %v298_v46 = vmul.f32 %v296_v45, %v277_v36  ;;  %v167_v36 = vadd.f32 %v1301_v4, %v1704_v22 }
 0x262   :  { %300 = vrot.lane.b32.xlu0 %v298_v46, %s1566_s19 }
 0x2d4   :  { %v301_v47 = vpop.permute.xlu0 %300 }
 0x2d5   :  { %303 = vst.msk [vmem:[#allocation2] sm:$0xff] %vm197_vm3, %v301_v47  ;;  %1328 = vmatmul.mubr.msk.f32.vlgmr.msra.gmra.mrb[6].mxu1 %vm197_vm3, %v301_v47 }
 0x2d6   :  { %1436 = vmatpush3.bf16.msra.mxu1 %v1649_v7  ;;  %1349 = vmatprep.mubr.msk.f32.mxu1 %vm1563_vm2, %v1564_v15 }
 0x2d7   :  { %1437 = vmatprep.subr.bf16.mxu1 %v1562_v9 }
 0x2da   :  { %1439 = vmatpush3.bf16.msra.mxu1 %v1671_v14 }
 0x2db   :  { %1446 = vmatprep.subr.bf16.mxu1 %v1562_v9 }
 0x3a8   :  { %v372_v49 = vpop.f32.mrb[6].mxu1 }
 0x3a9   :  { %v376_v50 = vadd.f32 %v372_v49, %v157_v48  ;;  %v1329_v51 = vpop.f32.mrb[7].mxu1 }
 0x3ab   :  { %v377_v52 = vmul.f32 0.5, %v376_v50 }
 0x3ad   :  { %v378_v53 = vsel %vm1711_vm6, %v376_v50, %v377_v52 }
 0x3ae   :  { %1486 = vtanh.f32 %v378_v53 }
 0x3b8   :  { %v1487_v54 = vpop.eup %1486 }
 0x3b9   :  { %v380_v55 = vmul.f32 0.5, %v1487_v54 }
 0x3bb   :  { %v381_v56 = vadd.f32 0.5, %v380_v55  ;;  %v172_v55 = vadd.f32 %v1704_v22, %v1699_v19 }
 0x3bd   :  { %v382_v57 = vsel %vm1711_vm6, %v1487_v54, %v381_v56 }
 0x3be   :  { %385 = vrot.lane.b32.xlu1 %v382_v57, %s1565_s3  ;;  %v383_v60 = vmul.f32 %v382_v57, %v292_v43 }
 0x430   :  { %v386_v58 = vpop.permute.xlu1 %385 }
 0x431   :  { %v388_v59 = vmul.f32 %v386_v58, %v382_v57 }
 0x433   :  { %390 = vrot.lane.b32.xlu0 %v388_v59, %s1566_s19 }
 0x4a5   :  { %v391_v61 = vpop.permute.xlu0 %390 }
 0x4a6   :  { %v393_v62 = vadd.f32 %v391_v61, %v383_v60 }
 0x4a8   :  { %1488 = vtanh.f32 %v393_v62 }
 0x4b2   :  { %v1489_v1 = vpop.eup %1488 }
 0x4b3   :  { %396 = vrot.lane.b32.xlu1 %v1489_v1, %s1565_s3 }
 0x525   :  { %v397_v2 = vpop.permute.xlu1 %396 }
 0x526   :  { %v399_v3 = vmul.f32 %v397_v2, %v382_v57 }
 0x528   :  { %401 = vrot.lane.b32.xlu0 %v399_v3, %s1566_s19 }
 0x59a   :  { %v402_v6 = vpop.permute.xlu0 %401 }
 0x59b   :  { %404 = vst.msk [vmem:[#allocation2 + $0x8] sm:$0xff] %vm197_vm3, %v402_v6  ;;  %1339 = vmatmul.mubr.msk.f32.vlgmr.msra.gmra.mrb[4].mxu0 %vm197_vm3, %v402_v6 }
 0x59c   :  { %1442 = vmatpush3.bf16.msra.mxu0 %v1649_v7  ;;  %1360 = vmatprep.mubr.msk.f32.mxu0 %vm1563_vm2, %v1564_v15 }
 0x59d   :  { %1443 = vmatprep.subr.bf16.mxu0 %v1562_v9 }
 0x5a0   :  { %1445 = vmatpush3.bf16.msra.mxu0 %v1671_v14 }
 0x5a1   :  { %1452 = vmatprep.subr.bf16.mxu0 %v1562_v9 }
 0x66e   :  { %v473_v10 = vpop.f32.mrb[4].mxu0 }
 0x66f   :  { %v477_v11 = vadd.f32 %v473_v10, %v162_v8  ;;  %v1340_v12 = vpop.f32.mrb[5].mxu0 }
 0x671   :  { %v478_v13 = vmul.f32 0.5, %v477_v11 }
 0x673   :  { %v479_v16 = vsel %vm1711_vm6, %v477_v11, %v478_v13  ;;  %v177_v11 = vadd.f32 %v1697_v18, %v1704_v22 }
 0x674   :  { %1490 = vtanh.f32 %v479_v16 }
 0x67e   :  { %v1491_v17 = vpop.eup %1490 }
 0x67f   :  { %v481_v20 = vmul.f32 0.5, %v1491_v17 }
 0x681   :  { %v482_v21 = vadd.f32 0.5, %v481_v20 }
 0x683   :  { %v483_v24 = vsel %vm1711_vm6, %v1491_v17, %v482_v21 }
 0x684   :  { %486 = vrot.lane.b32.xlu1 %v483_v24, %s1565_s3  ;;  %v484_v28 = vmul.f32 %v483_v24, %v393_v62 }
 0x6f6   :  { %v487_v26 = vpop.permute.xlu1 %486 }
 0x6f7   :  { %v489_v27 = vmul.f32 %v487_v26, %v483_v24 }
 0x6f9   :  { %491 = vrot.lane.b32.xlu0 %v489_v27, %s1566_s19 }
 0x76b   :  { %v492_v29 = vpop.permute.xlu0 %491 }
 0x76c   :  { %v494_v31 = vadd.f32 %v492_v29, %v484_v28  ;;  %v1019_v28 = vld [vmem:[%s1943_s4] sm:$0xff]  ;;  %v1020_v29 = vld [vmem:[%s1943_s4 + $0x8] sm:$0xff] }
 0x76e   :  { %1492 = vtanh.f32 %v494_v31 }
 0x778   :  { %v1493_v32 = vpop.eup %1492 }
 0x779   :  { %497 = vrot.lane.b32.xlu1 %v1493_v32, %s1565_s3 }
 0x7eb   :  { %v498_v33 = vpop.permute.xlu1 %497 }
 0x7ec   :  { %v500_v34 = vmul.f32 %v498_v33, %v483_v24 }
 0x7ee   :  { %502 = vrot.lane.b32.xlu0 %v500_v34, %s1566_s19 }
 0x860   :  { %v503_v35 = vpop.permute.xlu0 %502 }
 0x861   :  { %505 = vst.msk [vmem:[#allocation2 + $0x10] sm:$0xff] %vm197_vm3, %v503_v35  ;;  %1350 = vmatmul.mubr.msk.f32.vlgmr.msra.gmra.mrb[8].mxu1 %vm197_vm3, %v503_v35  ;;  %v1021_v35 = vld [vmem:[%s1943_s4 + $0x10] sm:$0xff] }
 0x862   :  { %1448 = vmatpush3.bf16.msra.mxu1 %v1649_v7  ;;  %1371 = vmatprep.mubr.msk.f32.mxu1 %vm1563_vm2, %v1564_v15 }
 0x863   :  { %1449 = vmatprep.subr.bf16.mxu1 %v1562_v9 }
 0x866   :  { %1451 = vmatpush3.bf16.msra.mxu1 %v1671_v14 }
 0x867   :  { %1458 = vmatprep.subr.bf16.mxu1 %v1562_v9 }
 0x934   :  { %v574_v37 = vpop.f32.mrb[8].mxu1 }
 0x935   :  { %v578_v38 = vadd.f32 %v574_v37, %v167_v36  ;;  %v1351_v39 = vpop.f32.mrb[9].mxu1  ;;  %v1022_v36 = vld [vmem:[%s1943_s4 + $0x18] sm:$0xff] }
 0x936   :  { %v1468_v37 = vpack.c.bf16 %v1022_v36, %v1021_v35  ;;  %v1011_v39 = vld [vmem:[#allocation2] sm:$0xff] }
 0x937   :  { %v579_v40 = vmul.f32 0.5, %v578_v38 }
 0x939   :  { %v580_v41 = vsel %vm1711_vm6, %v578_v38, %v579_v40  ;;  %v1012_v40 = vld [vmem:[#allocation2 + $0x8] sm:$0xff] }
 0x93a   :  { %1494 = vtanh.f32 %v580_v41  ;;  %v1013_v41 = vld [vmem:[#allocation2 + $0x10] sm:$0xff] }
 0x944   :  { %v1495_v42 = vpop.eup %1494 }
 0x945   :  { %v582_v43 = vmul.f32 0.5, %v1495_v42 }
 0x947   :  { %v583_v44 = vadd.f32 0.5, %v582_v43 }
 0x949   :  { %v584_v45 = vsel %vm1711_vm6, %v1495_v42, %v583_v44 }
 0x94a   :  { %587 = vrot.lane.b32.xlu1 %v584_v45, %s1565_s3  ;;  %v585_v48 = vmul.f32 %v584_v45, %v494_v31  ;;  %v1464_v31 = vpack.c.bf16 %v1020_v29, %v1019_v28 }
 0x9bc   :  { %v588_v46 = vpop.permute.xlu1 %587 }
 0x9bd   :  { %v590_v47 = vmul.f32 %v588_v46, %v584_v45 }
 0x9bf   :  { %592 = vrot.lane.b32.xlu0 %v590_v47, %s1566_s19 }
 0xa31   :  { %v593_v49 = vpop.permute.xlu0 %592 }
 0xa32   :  { %v595_v50 = vadd.f32 %v593_v49, %v585_v48 }
 0xa34   :  { %1496 = vtanh.f32 %v595_v50 }
 0xa3e   :  { %v1497_v51 = vpop.eup %1496 }
 0xa3f   :  { %598 = vrot.lane.b32.xlu1 %v1497_v51, %s1565_s3  ;;  %v1849_v51 = vld [vmem:[#allocation3] ss:$0 sm:$0xff] }
 0xab1   :  { %v599_v52 = vpop.permute.xlu1 %598 }
 0xab2   :  { %v601_v53 = vmul.f32 %v599_v52, %v584_v45  ;;  %v182_v45 = vadd.f32 %v1704_v22, %v1708_v25 }
 0xab4   :  { %603 = vrot.lane.b32.xlu0 %v601_v53, %s1566_s19 }
 0xb26   :  { %v604_v54 = vpop.permute.xlu0 %603 }
 0xb27   :  { %606 = vst.msk [vmem:[#allocation2 + $0x18] sm:$0xff] %vm197_vm3, %v604_v54  ;;  %1361 = vmatmul.mubr.msk.f32.vlgmr.msra.gmra.mrb[6].mxu0 %vm197_vm3, %v604_v54 }
 0xb28   :  { %1454 = vmatpush3.bf16.msra.mxu0 %v1649_v7  ;;  %1382 = vmatprep.mubr.msk.f32.mxu0 %vm1563_vm2, %v1564_v15 }
 0xb29   :  { %1455 = vmatprep.subr.bf16.mxu0 %v1562_v9 }
 0xb2c   :  { %1457 = vmatpush3.bf16.msra.mxu0 %v1671_v14 }
 0xb2d   :  { %1465 = vmatprep.subr.bf16.mxu0 %v1464_v31 }
 0xb2e   :  { %v1014_v42 = vld [vmem:[#allocation2 + $0x18] sm:$0xff] }
 0xbfa   :  { %v675_v56 = vpop.f32.mrb[6].mxu0 }
 0xbfb   :  { %v679_v57 = vadd.f32 %v675_v56, %v172_v55  ;;  %v1362_v58 = vpop.f32.mrb[7].mxu0 }
 0xbfd   :  { %v680_v59 = vmul.f32 0.5, %v679_v57 }
 0xbff   :  { %v681_v60 = vsel %vm1711_vm6, %v679_v57, %v680_v59 }
 0xc00   :  { %1498 = vtanh.f32 %v681_v60 }
 0xc0a   :  { %v1499_v61 = vpop.eup %1498 }
 0xc0b   :  { %v683_v62 = vmul.f32 0.5, %v1499_v61 }
 0xc0d   :  { %v684_v63 = vadd.f32 0.5, %v683_v62 }
 0xc0f   :  { %v685_v0 = vsel %vm1711_vm6, %v1499_v61, %v684_v63 }
 0xc10   :  { %688 = vrot.lane.b32.xlu1 %v685_v0, %s1565_s3  ;;  %v686_v19 = vmul.f32 %v685_v0, %v595_v50 }
 0xc82   :  { %v689_v1 = vpop.permute.xlu1 %688 }
 0xc83   :  { %v691_v2 = vmul.f32 %v689_v1, %v685_v0 }
 0xc85   :  { %693 = vrot.lane.b32.xlu0 %v691_v2, %s1566_s19 }
 0xcf7   :  { %v694_v3 = vpop.permute.xlu0 %693 }
 0xcf8   :  { %v696_v4 = vadd.f32 %v694_v3, %v686_v19 }
 0xcfa   :  { %1500 = vtanh.f32 %v696_v4 }
 0xd04   :  { %v1501_v5 = vpop.eup %1500 }
 0xd05   :  { %699 = vrot.lane.b32.xlu1 %v1501_v5, %s1565_s3 }
 0xd77   :  { %v700_v6 = vpop.permute.xlu1 %699 }
 0xd78   :  { %v702_v8 = vmul.f32 %v700_v6, %v685_v0 }
 0xd7a   :  { %704 = vrot.lane.b32.xlu0 %v702_v8, %s1566_s19 }
 0xdec   :  { %v705_v10 = vpop.permute.xlu0 %704 }
 0xded   :  { %707 = vst.msk [vmem:[#allocation2 + $0x20] sm:$0xff] %vm197_vm3, %v705_v10  ;;  %1372 = vmatmul.mubr.msk.f32.vlgmr.msra.gmra.mrb[10].mxu1 %vm197_vm3, %v705_v10 }
 0xdee   :  { %1460 = vmatpush3.bf16.msra.mxu1 %v1649_v7  ;;  %1393 = vmatprep.mubr.msk.f32.mxu1 %vm1563_vm2, %v1564_v15 }
 0xdef   :  { %1461 = vmatprep.subr.bf16.mxu1 %v1562_v9 }
 0xdf2   :  { %1463 = vmatpush3.bf16.msra.mxu1 %v1671_v14 }
 0xdf4   :  { %v1015_v43 = vld [vmem:[#allocation2 + $0x20] sm:$0xff] }
 0xec0   :  { %v776_v12 = vpop.f32.mrb[10].mxu1 }
 0xec1   :  { %v780_v13 = vadd.f32 %v776_v12, %v177_v11  ;;  %v1373_v16 = vpop.f32.mrb[11].mxu1 }
 0xec2   :  { %v187_v16 = vadd.f32 %v1706_v23, %v1704_v22 }
 0xec3   :  { %v781_v17 = vmul.f32 0.5, %v780_v13 }
 0xec5   :  { %v782_v20 = vsel %vm1711_vm6, %v780_v13, %v781_v17 }
 0xec6   :  { %1502 = vtanh.f32 %v782_v20 }
 0xed0   :  { %v1503_v21 = vpop.eup %1502 }
 0xed1   :  { %v784_v7 = vmul.f32 0.5, %v1503_v21 }
 0xed3   :  { %v785_v24 = vadd.f32 0.5, %v784_v7 }
 0xed5   :  { %v786_v15 = vsel %vm1711_vm6, %v1503_v21, %v785_v24 }
 0xed6   :  { %789 = vrot.lane.b32.xlu1 %v786_v15, %s1565_s3  ;;  %v787_v18 = vmul.f32 %v786_v15, %v696_v4 }
 0xf48   :  { %v790_v9 = vpop.permute.xlu1 %789 }
 0xf49   :  { %v792_v14 = vmul.f32 %v790_v9, %v786_v15 }
 0xf4b   :  { %794 = vrot.lane.b32.xlu0 %v792_v14, %s1566_s19 }
 0xfbd   :  { %v795_v26 = vpop.permute.xlu0 %794 }
 0xfbe   :  { %v1820_v27 = vadd.f32 %v795_v26, %v787_v18 }
 0xfc0   :  { %1504 = vtanh.f32 %v1820_v27 }
 0xfca   :  { %v1505_v32 = vpop.eup %1504 }
 0xfcb   :  { %800 = vrot.lane.b32.xlu1 %v1505_v32, %s1565_s3 }
0x103d   :  { %v801_v33 = vpop.permute.xlu1 %800 }
0x103e   :  { %v803_v34 = vmul.f32 %v801_v33, %v786_v15 }
0x1040   :  { %805 = vrot.lane.b32.xlu0 %v803_v34, %s1566_s19 }
0x10b2   :  { %v806_v38 = vpop.permute.xlu0 %805 }
0x10b3   :  { %808 = vst.msk [vmem:[#allocation2 + $0x28] sm:$0xff] %vm197_vm3, %v806_v38  ;;  %1383 = vmatmul.mubr.msk.f32.vlgmr.msra.gmra.mrb[8].mxu0 %vm197_vm3, %v806_v38 }
0x10b4   :  { %1467 = vmatpush3.bf16.msra.mxu0 %v1464_v31  ;;  %1404 = vmatprep.mubr.msk.f32.mxu0 %vm197_vm3, %v1011_v39 }
0x10b5   :  { %1469 = vmatprep.subr.bf16.mxu0 %v1468_v37 }
0x10b8   :  { %1471 = vmatpush3.bf16.msra.mxu0 %v1468_v37 }
0x10ba   :  { %v1016_v44 = vld [vmem:[#allocation2 + $0x28] sm:$0xff] }
0x10bb   :  { %1405 = vmatmul.mubr.msk.f32.vlgmr.msra.gmra.mrb[10].mxu0 %vm197_vm3, %v1012_v40 }
0x10bc   :  { %1407 = vmatprep.mubr.msk.f32.mxu0 %vm197_vm3, %v1013_v41 }
0x10bf   :  { %1408 = vmatmul.mubr.msk.f32.gmra.mrb[12].mxu0 %vm197_vm3, %v1014_v42 }
0x10c0   :  { %1410 = vmatprep.mubr.msk.f32.mxu0 %vm197_vm3, %v1015_v43 }
0x10c3   :  { %1411 = vmatmul.mubr.msk.f32.gmra.mrb[14].mxu0 %vm197_vm3, %v1016_v44 }
0x1186   :  { %v877_v46 = vpop.f32.mrb[8].mxu0 }
0x1187   :  { %v881_v47 = vadd.f32 %v877_v46, %v182_v45  ;;  %v1384_v48 = vpop.f32.mrb[9].mxu0 }
0x1189   :  { %v882_v49 = vmul.f32 0.5, %v881_v47 }
0x118b   :  { %v883_v50 = vsel %vm1711_vm6, %v881_v47, %v882_v49 }
0x118c   :  { %1506 = vtanh.f32 %v883_v50 }
0x118e   :  { %v1406_v52 = vpop.f32.mrb[10].mxu0 }
0x118f   :  { %v1126_v53 = vadd.f32 %v1406_v52, %v1849_v51  ;;  %v1120_v54 = vpop.f32.mrb[11].mxu0 }
0x1190   :  { %v1121_v55 = vadd.f32 %v1849_v51, %v1120_v54 }
0x1191   :  { %1161 = vst.msk [vmem:[%s1947_s8 + $0x8] sm:$0xff] %vm1159_vm7, %v1126_v53 }
0x1192   :  { %1160 = vst.msk [vmem:[%s1947_s8] sm:$0xff] %vm1159_vm7, %v1121_v55  ;;  %v1409_v25 = vpop.f32.mrb[12].mxu0 }
0x1193   :  { %v1136_v56 = vadd.f32 %v1409_v25, %v1849_v51  ;;  %v1130_v57 = vpop.f32.mrb[13].mxu0 }
0x1194   :  { %v1131_v58 = vadd.f32 %v1849_v51, %v1130_v57 }
0x1195   :  { %1163 = vst.msk [vmem:[%s1947_s8 + $0x18] sm:$0xff] %vm1159_vm7, %v1136_v56 }
0x1196   :  { %v1507_v59 = vpop.eup %1506  ;;  %1162 = vst.msk [vmem:[%s1947_s8 + $0x10] sm:$0xff] %vm1159_vm7, %v1131_v58  ;;  %v1412_v60 = vpop.f32.mrb[14].mxu0 }
0x1197   :  { %v1146_v61 = vadd.f32 %v1412_v60, %v1849_v51  ;;  %v1140_v62 = vpop.f32.mrb[15].mxu0  ;;  %v885_v63 = vmul.f32 0.5, %v1507_v59 }
0x1198   :  { %v1141_v0 = vadd.f32 %v1849_v51, %v1140_v62 }
0x1199   :  { %1165 = vst.msk [vmem:[%s1947_s8 + $0x28] sm:$0xff] %vm1159_vm7, %v1146_v61  ;;  %v886_v1 = vadd.f32 0.5, %v885_v63 }
0x119a   :  { %1164 = vst.msk [vmem:[%s1947_s8 + $0x20] sm:$0xff] %vm1159_vm7, %v1141_v0 }
0x119b   :  { %v887_v2 = vsel %vm1711_vm6, %v1507_v59, %v886_v1 }
0x119c   :  { %890 = vrot.lane.b32.xlu1 %v887_v2, %s1565_s3  ;;  %v888_v4 = vmul.f32 %v887_v2, %v1820_v27 }
0x120e   :  { %v891_v19 = vpop.permute.xlu1 %890 }
0x120f   :  { %v893_v3 = vmul.f32 %v891_v19, %v887_v2 }
0x1211   :  { %895 = vrot.lane.b32.xlu0 %v893_v3, %s1566_s19 }
0x1283   :  { %v896_v5 = vpop.permute.xlu0 %895 }
0x1284   :  { %v898_v6 = vadd.f32 %v896_v5, %v888_v4 }
0x1286   :  { %1508 = vtanh.f32 %v898_v6 }
0x1290   :  { %v1509_v8 = vpop.eup %1508 }
0x1291   :  { %901 = vrot.lane.b32.xlu1 %v1509_v8, %s1565_s3 }
0x1303   :  { %v902_v10 = vpop.permute.xlu1 %901 }
0x1304   :  { %v904_v11 = vmul.f32 %v902_v10, %v887_v2 }
0x1306   :  { %906 = vrot.lane.b32.xlu0 %v904_v11, %s1566_s19 }
0x1378   :  { %v907_v12 = vpop.permute.xlu0 %906 }
0x1379   :  { %909 = vst.msk [vmem:[#allocation2 + $0x30] sm:$0xff] %vm197_vm3, %v907_v12  ;;  %1394 = vmatmul.mubr.msk.f32.vlgmr.msra.gmra.mrb[12].mxu1 %vm197_vm3, %v907_v12 }
0x1380   :  { %v1017_v13 = vld [vmem:[#allocation2 + $0x30] sm:$0xff] }
0x1381   :  { %1413 = vmatprep.mubr.msk.f32.mxu0 %vm197_vm3, %v1017_v13 }
0x144c   :  { %v978_v17 = vpop.f32.mrb[12].mxu1 }
0x144d   :  { %v982_v20 = vadd.f32 %v978_v17, %v187_v16  ;;  %v1395_v21 = vpop.f32.mrb[13].mxu1 }
0x144f   :  { %v983_v7 = vmul.f32 0.5, %v982_v20 }
0x1451   :  { %v984_v24 = vsel %vm1711_vm6, %v982_v20, %v983_v7 }
0x1452   :  { %1510 = vtanh.f32 %v984_v24 }
0x145c   :  { %v1511_v15 = vpop.eup %1510 }
0x145d   :  { %v986_v9 = vmul.f32 0.5, %v1511_v15 }
0x145f   :  { %v987_v14 = vadd.f32 0.5, %v986_v9 }
0x1461   :  { %v988_v18 = vsel %vm1711_vm6, %v1511_v15, %v987_v14 }
0x1462   :  { %991 = vrot.lane.b32.xlu1 %v988_v18, %s1565_s3  ;;  %v989_v22 = vmul.f32 %v988_v18, %v898_v6 }
0x14d4   :  { %v992_v26 = vpop.permute.xlu1 %991 }
0x14d5   :  { %v994_v27 = vmul.f32 %v992_v26, %v988_v18 }
0x14d7   :  { %996 = vrot.lane.b32.xlu0 %v994_v27, %s1566_s19 }
0x1549   :  { %v997_v23 = vpop.permute.xlu0 %996 }
0x154a   :  { %v999_v28 = vadd.f32 %v997_v23, %v989_v22 }
0x154c   :  { %1512 = vtanh.f32 %v999_v28 }
0x1556   :  { %v1513_v29 = vpop.eup %1512 }
0x1557   :  { %1002 = vrot.lane.b32.xlu1 %v1513_v29, %s1565_s3  ;;  %s1569_s3 = smov [#allocation6]  }
0x1558   :  { %s1192_s20 = sshll.u32 %s1569_s3, 4  ;;  %s1193_s20 = int_to_ptr.vmem [resolvable:$true] %s1192_s20 }
0x155b   :  { %1170 = vrot.lane.b32.xlu1 %v999_v28, %s1567_s17 }
0x15c9   :  { %v1003_v31 = vpop.permute.xlu1 %1002 }
0x15ca   :  { %v1005_v32 = vmul.f32 %v1003_v31, %v988_v18 }
0x15cc   :  { %1007 = vrot.lane.b32.xlu0 %v1005_v32, %s1566_s19 }
0x15cd   :  { %v1171_v30 = vpop.permute.xlu1 %1170 }
0x15ce   :  { %1173 = vst.msk [vmem:[#allocation6] sm:$0xff] %vm197_vm3, %v1171_v30 }
0x163e   :  { %v1008_v33 = vpop.permute.xlu0 %1007 }
0x163f   :  { %1010 = vst.msk [vmem:[#allocation2 + $0x38] sm:$0xff] %vm197_vm3, %v1008_v33  ;;  %1168 = vst.msk [vmem:[#allocation4] sm:$0xff] %vm197_vm3, %v1008_v33 }
0x1646   :  { %v1018_v34 = vld [vmem:[#allocation2 + $0x38] sm:$0xff] }
0x1647   :  { %1414 = vmatmul.mubr.msk.f32.gmra.mrb[16].mxu0 %vm197_vm3, %v1018_v34 }
0x1648   :  { %1525 = shalt.err (!%p1522_p4)
}
0x1649   :  { %s1526_s0 = scalar_lea.hbm %s1948_s9, 128 }
0x164a   :  { %p1527_p5 = scmp.ne.s32.totalorder %s1948_s9, %s1526_s0  ;;  %p1530_p6 = scmp.lt.u32.totalorder %s1526_s0, %s1948_s9 }
0x164c   :  { %p1532_p7 = pnand %p1530_p6, %p1527_p5 }
0x164e   :  { %1535 = shalt.err (!%p1532_p7)
}
0x164f   :  { %1185 = dma.vmem_to_hbm [thread:$0]  %s1183_s7, 128, %s1948_s9, [#allocation5]  }
0x1650   :  { %s1536_s27 = scalar_lea.vmem %s1193_s20, 128  ;;  %p1541_p9 = scmp.lt.s32.totalorder %s1193_s20, %s1193_s20 }
0x1651   :  { %p1537_p8 = scmp.ne.s32.totalorder %s1193_s20, %s1536_s27  ;;  %p1542_p10 = scmp.lt.s32.totalorder %s1536_s27, %s1536_s27 }
0x1653   :  { %p1543_p11 = por %p1542_p10, %p1541_p9 }
0x1655   :  { %p1544_p12 = pnand %p1543_p11, %p1537_p8 }
0x1657   :  { %1547 = shalt.err (!%p1544_p12)
}
0x1658   :  { %s1548_s29 = scalar_lea.hbm %s1949_s10, 128 }
0x1659   :  { %p1549_p13 = scmp.ne.s32.totalorder %s1949_s10, %s1548_s29  ;;  %p1552_p0 = scmp.lt.u32.totalorder %s1548_s29, %s1949_s10 }
0x165b   :  { %p1554_p1 = pnand %p1552_p0, %p1549_p13 }
0x165d   :  { %1557 = shalt.err (!%p1554_p1)
}
0x165e   :  { %1195 = dma.vmem_to_hbm [thread:$0]  %s1193_s20, 128, %s1949_s10, [#allocation7]  }
0x171a   :  { %v1415_v35 = vpop.f32.mrb[16].mxu0 }
0x171b   :  { %v1156_v36 = vadd.f32 %v1415_v35, %v1849_v51  ;;  %v1150_v37 = vpop.f32.mrb[17].mxu0 }
0x171c   :  { %v1151_v38 = vadd.f32 %v1849_v51, %v1150_v37 }
0x171d   :  { %1167 = vst.msk [vmem:[%s1947_s8 + $0x38] sm:$0xff] %vm1159_vm7, %v1156_v36 }
0x171e   :  { %1166 = vst.msk [vmem:[%s1947_s8 + $0x30] sm:$0xff] %vm1159_vm7, %v1151_v38 }
0x171f   :  { %1558 = dma.done.wait [#allocation5], 128  }
0x1720   :  { %1559 = vsyncadd [#allocation5], 4294967168 }
0x1721   :  { %1560 = dma.done.wait [#allocation7], 128  }
0x1722   :  { %1561 = vsyncadd [#allocation7], 4294967168 }
0x1723   :  { %1204 = vsyncpa [#allocation5], 1 }
0x1724   :  { %1205 = vsyncpa [#allocation7], 1 }

</bundles_post_ra>
